<compile_context>
chip_gen: v7x
topology: tpu7x:2x2x1
jax: 0.10.0
libtpu: 0.0.40
codegen_flags: <defaults>
</compile_context>

<pallas_src>
import numpy as np
import jax
import jax.numpy as jnp
from jax.experimental import pallas as pl
from jax.experimental.pallas import tpu as pltpu


def _round_up(x, m):
    return ((x + m - 1) // m) * m


def _choose_tiling(batch, max_tile_b):
    """Pick (tile_b, n_tiles).  Prefer >=2 (even #) tiles so both TensorCores
    are busy on 2-TC chips (v7x); harmless on single-TC v5e/v6e."""
    max_tile_b = max(8, _round_up(int(max_tile_b), 8))
    if batch <= 16:
        tile = max(8, _round_up(batch, 8))
        return tile, pl.cdiv(batch, tile)
    n = max(2, pl.cdiv(batch, max_tile_b))
    if n % 2:
        n += 1
    tile = min(max_tile_b, _round_up(pl.cdiv(batch, n), 8))
    return tile, pl.cdiv(batch, tile)


def _mc_mlp_kernel(cgm_ref, oth_ref, w1_ref, w2_ref, b12_ref,
                   w3_ref, b3_ref, w4_ref, b4_ref, w5_ref, b5_ref, out_ref):
    # Fused encoders: W1/W2 are zero-padded to all 96 "combined" columns, so
    #   relu(xc@W1p + xo@W2p + b12) == concat(relu(xc@W1+b1), relu(xo@W2+b2)).
    xc = cgm_ref[...].astype(jnp.bfloat16)              # [T, d_cgm]
    xo = oth_ref[...].astype(jnp.bfloat16)              # [T, d_oth]
    a1 = (jnp.dot(xc, w1_ref[...], preferred_element_type=jnp.float32)
          + jnp.dot(xo, w2_ref[...], preferred_element_type=jnp.float32)
          + b12_ref[...])
    h12 = jnp.maximum(a1, 0.0).astype(jnp.bfloat16)     # [T, 96]  bf16 staging

    # Combined layer 1: Linear(96, 128) -> ReLU
    a3 = jnp.dot(h12, w3_ref[...],
                 preferred_element_type=jnp.float32) + b3_ref[...]
    h3 = jnp.maximum(a3, 0.0).astype(jnp.bfloat16)      # [T, 128] bf16 staging

    # Combined layer 2: Linear(128, 64) -> ReLU
    a4 = jnp.dot(h3, w4_ref[...],
                 preferred_element_type=jnp.float32) + b4_ref[...]
    h4 = jnp.maximum(a4, 0.0)                           # [T, 64]  f32

    # Head Linear(64, 1), computed transposed so the per-tile result is a
    # lane-dense [1, T] row (XLU transpose + M=1 MXU matmul; both units idle).
    row = jnp.dot(w5_ref[...], h4.T,
                  preferred_element_type=jnp.float32)   # [1, T]
    out_ref[0] = row + b5_ref[0, 0]                     # b5 scalar from SMEM


def monte_carlo_forward(cgm_input, other_input, params, max_tile_b=2048):
    """cgm_input: [B, *cgm_shape]; other_input: [B, *other_shape] -> [B, 1]."""
    B = cgm_input.shape[0]
    # Flatten only — no concat/cast/pad HBM pre-passes; the kernel reads the
    # raw f32 rows and casts to bf16 in VMEM.
    cgm_flat = cgm_input.reshape(B, -1)
    oth_flat = other_input.reshape(B, -1)
    d_cgm = cgm_flat.shape[1]
    d_oth = oth_flat.shape[1]

    tile_b, n_tiles = _choose_tiling(B, max_tile_b)

    w1, w2, b12 = params["w1"], params["w2"], params["b12"]
    w3, b3 = params["w3"], params["b3"]
    w4, b4 = params["w4"], params["b4"]
    w5, b5 = params["w5"], params["b5"]

    def resident(arr):
        # Same block every grid step -> weights stay VMEM-resident across tiles.
        return pl.BlockSpec(arr.shape, lambda i: (0,) * arr.ndim)

    weights = (w1, w2, b12, w3, b3, w4, b4, w5, b5)
    weight_bytes = sum(int(np.prod(p.shape)) * p.dtype.itemsize for p in weights)
    rows = n_tiles * tile_b
    flops = 2 * rows * (d_cgm * 96 + d_oth * 96 + 96 * 128 + 128 * 64 + 64)
    # Layout-padded HBM traffic: f32 inputs are lane-padded to 128 in their
    # (8,128)-tiled layouts; output is one lane-dense f32 per row.
    bytes_accessed = (rows * (_round_up(d_cgm, 128) + _round_up(d_oth, 128)) * 4
                      + rows * 4 + weight_bytes)
    cost = pl.CostEstimate(flops=flops, transcendentals=0,
                           bytes_accessed=bytes_accessed)

    # Rough per-step VMEM (double-buffered lane-padded inputs + staged
    # intermediates): ~4 KiB/row is generous.  Raise above v5e's 16 MiB scoped
    # default, stay comfortably under v7x's 64 MiB physical VMEM.
    vmem_est = tile_b * 4096 + (1 << 20)
    vmem_limit = int(min(56 << 20, max(32 << 20, 2 * vmem_est)))

    out = pl.pallas_call(
        _mc_mlp_kernel,
        out_shape=jax.ShapeDtypeStruct((n_tiles, 1, tile_b), jnp.float32),
        grid=(n_tiles,),
        in_specs=[
            pl.BlockSpec((tile_b, d_cgm), lambda i: (i, 0)),    # cgm rows (pipelined)
            pl.BlockSpec((tile_b, d_oth), lambda i: (i, 0)),    # other rows (pipelined)
            resident(w1), resident(w2), resident(b12),
            resident(w3), resident(b3),
            resident(w4), resident(b4),
            resident(w5),
            pl.BlockSpec(memory_space=pltpu.MemorySpace.SMEM),  # b5 scalar
        ],
        out_specs=pl.BlockSpec((1, 1, tile_b), lambda i: (i, 0, 0)),
        compiler_params=pltpu.CompilerParams(
            dimension_semantics=("parallel",),
            vmem_limit_bytes=vmem_limit),
        cost_estimate=cost,
    )(cgm_flat, oth_flat, w1, w2, b12, w3, b3, w4, b4, w5, b5)

    # Lane-dense (n_tiles, 1, tile_b) -> [B, 1]; ragged-tail garbage dropped.
    return out.reshape(-1)[:B].reshape(B, 1)


def init_params(cgm_shape, other_features_shape, key):
    """Deterministic init mimicking nn.Linear; weights stored [in, out]."""
    d_cgm = int(np.prod(cgm_shape))
    d_oth = int(np.prod(other_features_shape))
    keys = jax.random.split(key, 10)

    def lin(kw, kb, fan_in, fan_out):
        bound = 1.0 / np.sqrt(float(fan_in))
        w = jax.random.uniform(kw, (fan_in, fan_out), jnp.float32,
                               minval=-bound, maxval=bound)
        b = jax.random.uniform(kb, (1, fan_out), jnp.float32,
                               minval=-bound, maxval=bound)
        return w, b

    w1, b1 = lin(keys[0], keys[1], d_cgm, 64)
    w2, b2 = lin(keys[2], keys[3], d_oth, 32)
    w3, b3 = lin(keys[4], keys[5], 96, 128)
    w4, b4 = lin(keys[6], keys[7], 128, 64)
    w5, b5 = lin(keys[8], keys[9], 64, 1)

    # Encoder fusion: pad each encoder weight to all 96 combined columns so
    # relu(xc@W1p + xo@W2p + b12) == concat(relu(xc@W1+b1), relu(xo@W2+b2)).
    w1p = jnp.zeros((d_cgm, 96), jnp.float32).at[:, :64].set(w1)
    w2p = jnp.zeros((d_oth, 96), jnp.float32).at[:, 64:].set(w2)
    b12 = jnp.concatenate([b1, b2], axis=1)

    return {
        "w1": w1p.astype(jnp.bfloat16), "w2": w2p.astype(jnp.bfloat16),
        "b12": b12,                                                # biases stay f32
        "w3": w3.astype(jnp.bfloat16), "b3": b3,
        "w4": w4.astype(jnp.bfloat16), "b4": b4,
        "w5": w5.reshape(1, 64),                                   # f32 head row
        "b5": b5.reshape(1, 1),                                    # f32 SMEM scalar
    }


if __name__ == "__main__":
    # Small shapes consistent with the module: CGM series [B, 16, 3],
    # other features [B, 6].
    cgm_shape = (16, 3)
    other_features_shape = (6,)
    B = 2

    root = jax.random.PRNGKey(0)
    k_cgm, k_oth, k_par = jax.random.split(root, 3)

    cgm_input = jax.random.normal(k_cgm, (B,) + cgm_shape, dtype=jnp.float32)
    other_input = jax.random.normal(
        k_oth, (B,) + other_features_shape, dtype=jnp.float32)
    params = init_params(cgm_shape, other_features_shape, k_par)

    fwd = jax.jit(lambda c, o: monte_carlo_forward(c, o, params))
    out = jax.block_until_ready(fwd(cgm_input, other_input))
    assert out.shape == (B, 1)
    assert out.dtype == jnp.float32

    # Pure-JAX reference with the same bf16-operand / f32-accumulate recipe.
    def rr(x):  # bf16 round-trip
        return x.astype(jnp.bfloat16).astype(jnp.float32)

    xc = cgm_input.reshape(B, -1)
    xo = other_input.reshape(B, -1)
    w1f = params["w1"].astype(jnp.float32)
    w2f = params["w2"].astype(jnp.float32)
    w3f = params["w3"].astype(jnp.float32)
    w4f = params["w4"].astype(jnp.float32)
    a1 = rr(xc) @ w1f + rr(xo) @ w2f + params["b12"]
    h12 = rr(jnp.maximum(a1, 0.0))
    a3 = h12 @ w3f + params["b3"]
    h3 = rr(jnp.maximum(a3, 0.0))
    a4 = h3 @ w4f + params["b4"]
    h4 = jnp.maximum(a4, 0.0)
    ref = h4 @ params["w5"].T + params["b5"]

    np.testing.assert_allclose(np.asarray(out), np.asarray(ref),
                               rtol=2e-2, atol=2e-2)

    print("KERNEL_OK")
</pallas_src>

<mosaic_0001>
module attributes {stable_mosaic.version = 11 : i64} {
  func.func @_mc_mlp_kernel(%arg0: i32, %arg1: memref<8x48xf32, #tpu.memory_space<vmem>>, %arg2: memref<8x6xf32, #tpu.memory_space<vmem>>, %arg3: memref<48x96xbf16, #tpu.memory_space<vmem>>, %arg4: memref<6x96xbf16, #tpu.memory_space<vmem>>, %arg5: memref<1x96xf32, #tpu.memory_space<vmem>>, %arg6: memref<96x128xbf16, #tpu.memory_space<vmem>>, %arg7: memref<1x128xf32, #tpu.memory_space<vmem>>, %arg8: memref<128x64xbf16, #tpu.memory_space<vmem>>, %arg9: memref<1x64xf32, #tpu.memory_space<vmem>>, %arg10: memref<1x64xf32, #tpu.memory_space<vmem>>, %arg11: memref<1x1xf32, #tpu.memory_space<smem>>, %arg12: memref<1x1x8xf32, #tpu.memory_space<vmem>>) attributes {dimension_semantics = [#tpu.dimension_semantics<parallel>], iteration_bounds = array<i64: 1>, scalar_prefetch = 0 : i64, scratch_operands = 0 : i64, tpu.core_type = #tpu.core_type<tc>, window_params = [{transform_indices = @transform_0, window_bounds = array<i64: 8, 48>}, {transform_indices = @transform_1, window_bounds = array<i64: 8, 6>}, {pipeline_mode = #tpu.pipeline_mode<synchronous>, transform_indices = @transform_2, window_bounds = array<i64: 48, 96>}, {pipeline_mode = #tpu.pipeline_mode<synchronous>, transform_indices = @transform_3, window_bounds = array<i64: 6, 96>}, {pipeline_mode = #tpu.pipeline_mode<synchronous>, transform_indices = @transform_4, window_bounds = array<i64: 1, 96>}, {pipeline_mode = #tpu.pipeline_mode<synchronous>, transform_indices = @transform_5, window_bounds = array<i64: 96, 128>}, {pipeline_mode = #tpu.pipeline_mode<synchronous>, transform_indices = @transform_6, window_bounds = array<i64: 1, 128>}, {pipeline_mode = #tpu.pipeline_mode<synchronous>, transform_indices = @transform_7, window_bounds = array<i64: 128, 64>}, {pipeline_mode = #tpu.pipeline_mode<synchronous>, transform_indices = @transform_8, window_bounds = array<i64: 1, 64>}, {pipeline_mode = #tpu.pipeline_mode<synchronous>, transform_indices = @transform_9, window_bounds = array<i64: 1, 64>}, {transform_indices = @transform_10, window_bounds = array<i64: 1, 1>}, {transform_indices = @transform_11, window_bounds = array<i64: 1, 1, 8>}]} {
    %c0 = arith.constant 0 : index
    %c0_0 = arith.constant 0 : index
    %0 = vector.load %arg1[%c0, %c0_0] : memref<8x48xf32, #tpu.memory_space<vmem>>, vector<8x48xf32>
    %1 = arith.truncf %0 : vector<8x48xf32> to vector<8x48xbf16>
    %c0_1 = arith.constant 0 : index
    %c0_2 = arith.constant 0 : index
    %2 = vector.load %arg2[%c0_1, %c0_2] : memref<8x6xf32, #tpu.memory_space<vmem>>, vector<8x6xf32>
    %3 = arith.truncf %2 : vector<8x6xf32> to vector<8x6xbf16>
    %c0_3 = arith.constant 0 : index
    %c0_4 = arith.constant 0 : index
    %4 = vector.load %arg3[%c0_3, %c0_4] : memref<48x96xbf16, #tpu.memory_space<vmem>>, vector<48x96xbf16>
    %cst = arith.constant dense<0.000000e+00> : vector<8x96xf32>
    %5 = tpu.matmul %1, %4, %cst {dimension_numbers = #tpu.dot_dimension_numbers<[1], [0], [0], [1], [0, 0, 1, 1], [], []>} : vector<8x48xbf16>, vector<48x96xbf16>, vector<8x96xf32> -> vector<8x96xf32>
    %c0_5 = arith.constant 0 : index
    %c0_6 = arith.constant 0 : index
    %6 = vector.load %arg4[%c0_5, %c0_6] : memref<6x96xbf16, #tpu.memory_space<vmem>>, vector<6x96xbf16>
    %cst_7 = arith.constant dense<0.000000e+00> : vector<8x96xf32>
    %7 = tpu.matmul %3, %6, %cst_7 {dimension_numbers = #tpu.dot_dimension_numbers<[1], [0], [0], [1], [0, 0, 1, 1], [], []>} : vector<8x6xbf16>, vector<6x96xbf16>, vector<8x96xf32> -> vector<8x96xf32>
    %8 = arith.addf %5, %7 : vector<8x96xf32>
    %c0_8 = arith.constant 0 : index
    %c0_9 = arith.constant 0 : index
    %9 = vector.load %arg5[%c0_8, %c0_9] : memref<1x96xf32, #tpu.memory_space<vmem>>, vector<1x96xf32>
    %10 = vector.broadcast %9 : vector<1x96xf32> to vector<8x96xf32>
    %11 = arith.addf %8, %10 : vector<8x96xf32>
    %cst_10 = arith.constant 0.000000e+00 : f32
    %12 = vector.broadcast %cst_10 : f32 to vector<8x96xf32>
    %13 = arith.maximumf %11, %12 : vector<8x96xf32>
    %14 = arith.truncf %13 : vector<8x96xf32> to vector<8x96xbf16>
    %c0_11 = arith.constant 0 : index
    %c0_12 = arith.constant 0 : index
    %15 = vector.load %arg6[%c0_11, %c0_12] : memref<96x128xbf16, #tpu.memory_space<vmem>>, vector<96x128xbf16>
    %cst_13 = arith.constant dense<0.000000e+00> : vector<8x128xf32>
    %16 = tpu.matmul %14, %15, %cst_13 {dimension_numbers = #tpu.dot_dimension_numbers<[1], [0], [0], [1], [0, 0, 1, 1], [], []>} : vector<8x96xbf16>, vector<96x128xbf16>, vector<8x128xf32> -> vector<8x128xf32>
    %c0_14 = arith.constant 0 : index
    %c0_15 = arith.constant 0 : index
    %17 = vector.load %arg7[%c0_14, %c0_15] : memref<1x128xf32, #tpu.memory_space<vmem>>, vector<1x128xf32>
    %18 = vector.broadcast %17 : vector<1x128xf32> to vector<8x128xf32>
    %19 = arith.addf %16, %18 : vector<8x128xf32>
    %cst_16 = arith.constant 0.000000e+00 : f32
    %20 = vector.broadcast %cst_16 : f32 to vector<8x128xf32>
    %21 = arith.maximumf %19, %20 : vector<8x128xf32>
    %22 = arith.truncf %21 : vector<8x128xf32> to vector<8x128xbf16>
    %c0_17 = arith.constant 0 : index
    %c0_18 = arith.constant 0 : index
    %23 = vector.load %arg8[%c0_17, %c0_18] : memref<128x64xbf16, #tpu.memory_space<vmem>>, vector<128x64xbf16>
    %cst_19 = arith.constant dense<0.000000e+00> : vector<8x64xf32>
    %24 = tpu.matmul %22, %23, %cst_19 {dimension_numbers = #tpu.dot_dimension_numbers<[1], [0], [0], [1], [0, 0, 1, 1], [], []>} : vector<8x128xbf16>, vector<128x64xbf16>, vector<8x64xf32> -> vector<8x64xf32>
    %c0_20 = arith.constant 0 : index
    %c0_21 = arith.constant 0 : index
    %25 = vector.load %arg9[%c0_20, %c0_21] : memref<1x64xf32, #tpu.memory_space<vmem>>, vector<1x64xf32>
    %26 = vector.broadcast %25 : vector<1x64xf32> to vector<8x64xf32>
    %27 = arith.addf %24, %26 : vector<8x64xf32>
    %cst_22 = arith.constant 0.000000e+00 : f32
    %28 = vector.broadcast %cst_22 : f32 to vector<8x64xf32>
    %29 = arith.maximumf %27, %28 : vector<8x64xf32>
    %c0_23 = arith.constant 0 : index
    %c0_24 = arith.constant 0 : index
    %30 = vector.load %arg10[%c0_23, %c0_24] : memref<1x64xf32, #tpu.memory_space<vmem>>, vector<1x64xf32>
    %31 = tpu.transpose %29, [1, 0] : vector<8x64xf32> -> vector<64x8xf32>
    %cst_25 = arith.constant dense<0.000000e+00> : vector<1x8xf32>
    %32 = tpu.matmul %30, %31, %cst_25 {dimension_numbers = #tpu.dot_dimension_numbers<[1], [0], [0], [1], [0, 0, 1, 1], [], []>} : vector<1x64xf32>, vector<64x8xf32>, vector<1x8xf32> -> vector<1x8xf32>
    %c0_26 = arith.constant 0 : index
    %c0_27 = arith.constant 0 : index
    %33 = memref.load %arg11[%c0_26, %c0_27] : memref<1x1xf32, #tpu.memory_space<smem>>
    %34 = vector.broadcast %33 : f32 to vector<1x8xf32>
    %35 = arith.addf %32, %34 : vector<1x8xf32>
    %c0_28 = arith.constant 0 : index
    %c0_29 = arith.constant 0 : index
    %c0_30 = arith.constant 0 : index
    %36 = vector.load %arg12[%c0_28, %c0_29, %c0_30] : memref<1x1x8xf32, #tpu.memory_space<vmem>>, vector<1x1x8xf32>
    %37 = vector.shape_cast %36 : vector<1x1x8xf32> to vector<1x8xf32>
    %38 = vector.shape_cast %35 : vector<1x8xf32> to vector<1x1x8xf32>
    tpu.vector_store %arg12[%c0_28, %c0_29, %c0_30], %38 {strides = array<i32>} : memref<1x1x8xf32, #tpu.memory_space<vmem>>, vector<1x1x8xf32>,
    return
  }
  func.func @transform_0(%arg0: i32) -> (i32, i32) {
    %c0_i32 = arith.constant 0 : i32
    %c0_i32_0 = arith.constant 0 : i32
    return %arg0, %c0_i32 : i32, i32
  }
  func.func @transform_1(%arg0: i32) -> (i32, i32) {
    %c0_i32 = arith.constant 0 : i32
    %c0_i32_0 = arith.constant 0 : i32
    return %arg0, %c0_i32 : i32, i32
  }
  func.func @transform_2(%arg0: i32) -> (i32, i32) {
    %c0_i32 = arith.constant 0 : i32
    %c0_i32_0 = arith.constant 0 : i32
    %c0_i32_1 = arith.constant 0 : i32
    return %c0_i32, %c0_i32_0 : i32, i32
  }
  func.func @transform_3(%arg0: i32) -> (i32, i32) {
    %c0_i32 = arith.constant 0 : i32
    %c0_i32_0 = arith.constant 0 : i32
    %c0_i32_1 = arith.constant 0 : i32
    return %c0_i32, %c0_i32_0 : i32, i32
  }
  func.func @transform_4(%arg0: i32) -> (i32, i32) {
    %c0_i32 = arith.constant 0 : i32
    %c0_i32_0 = arith.constant 0 : i32
    %c0_i32_1 = arith.constant 0 : i32
    return %c0_i32, %c0_i32_0 : i32, i32
  }
  func.func @transform_5(%arg0: i32) -> (i32, i32) {
    %c0_i32 = arith.constant 0 : i32
    %c0_i32_0 = arith.constant 0 : i32
    %c0_i32_1 = arith.constant 0 : i32
    return %c0_i32, %c0_i32_0 : i32, i32
  }
  func.func @transform_6(%arg0: i32) -> (i32, i32) {
    %c0_i32 = arith.constant 0 : i32
    %c0_i32_0 = arith.constant 0 : i32
    %c0_i32_1 = arith.constant 0 : i32
    return %c0_i32, %c0_i32_0 : i32, i32
  }
  func.func @transform_7(%arg0: i32) -> (i32, i32) {
    %c0_i32 = arith.constant 0 : i32
    %c0_i32_0 = arith.constant 0 : i32
    %c0_i32_1 = arith.constant 0 : i32
    return %c0_i32, %c0_i32_0 : i32, i32
  }
  func.func @transform_8(%arg0: i32) -> (i32, i32) {
    %c0_i32 = arith.constant 0 : i32
    %c0_i32_0 = arith.constant 0 : i32
    %c0_i32_1 = arith.constant 0 : i32
    return %c0_i32, %c0_i32_0 : i32, i32
  }
  func.func @transform_9(%arg0: i32) -> (i32, i32) {
    %c0_i32 = arith.constant 0 : i32
    %c0_i32_0 = arith.constant 0 : i32
    %c0_i32_1 = arith.constant 0 : i32
    return %c0_i32, %c0_i32_0 : i32, i32
  }
  func.func @transform_10(%arg0: i32) -> (i32, i32) {
    %c0_i32 = arith.constant 0 : i32
    %c0_i32_0 = arith.constant 0 : i32
    %c0_i32_1 = arith.constant 0 : i32
    return %c0_i32, %c0_i32_0 : i32, i32
  }
  func.func @transform_11(%arg0: i32) -> (i32, i32, i32) {
    %c0_i32 = arith.constant 0 : i32
    %c0_i32_0 = arith.constant 0 : i32
    %c0_i32_1 = arith.constant 0 : i32
    return %arg0, %c0_i32, %c0_i32_0 : i32, i32, i32
  }
}

</mosaic_0001>

<bundles_post_ra>
// kernel: _lambda_.1
= control target key start
LH: loop header
LB: loop body
LE: loop exit
PB: predicated region body
PF: predicated region fallthrough
CT: control target
= control target key end

     0   :  { %17 = vsyncpa [#allocation4], 0  ;;  %s860_s0 = inlined_call_operand.vmem [shape: f32[2,48], index: 0, kind: input, shape index: {}]   ;;  %s861_s1 = inlined_call_operand.vmem [shape: f32[2,6], index: 1, kind: input, shape index: {}]   ;;  %s862_s2 = inlined_call_operand.hbm [shape: bf16[48,96], index: 2, kind: input, shape index: {}]   ;;  %s863_s3 = inlined_call_operand.vmem [shape: bf16[6,96], index: 3, kind: input, shape index: {}]   ;;  %s864_s4 = inlined_call_operand.hbm [shape: f32[1,96], index: 4, kind: input, shape index: {}]   ;;  %s865_s5 = inlined_call_operand.vmem [shape: bf16[96,128], index: 5, kind: input, shape index: {}]   ;;  %s866_s6 = inlined_call_operand.vmem [shape: f32[1,128], index: 6, kind: input, shape index: {}]   ;;  %s867_s7 = inlined_call_operand.vmem [shape: bf16[128,64], index: 7, kind: input, shape index: {}]   ;;  %s868_s8 = inlined_call_operand.vmem [shape: f32[1,64], index: 8, kind: input, shape index: {}]   ;;  %s869_s9 = inlined_call_operand.vmem [shape: f32[1,64], index: 9, kind: input, shape index: {}]   ;;  %s870_s10 = inlined_call_operand.<no memory space> [shape: f32[1,1], index: 10, kind: input, shape index: {}]   ;;  %s871_s11 = inlined_call_operand.vmem [shape: f32[1,1,8], index: 11, kind: output, shape index: {}]  }
   0x1   :  { %18 = vsyncpa [#allocation6], 0  ;;  %s675_s17 = smov [#allocation3]   ;;  %s627_s21 = scalar_lea.hbm %s862_s2, 384 }
   0x2   :  { %s28_s18 = sshll.u32 %s675_s17, 4  ;;  %p628_p0 = scmp.ne.s32.totalorder %s862_s2, %s627_s21  ;;  %s29_s18 = int_to_ptr.vmem [resolvable:$true] %s28_s18 }
   0x3   :  { %p631_p1 = scmp.lt.u32.totalorder %s627_s21, %s862_s2 }
   0x5   :  { %p633_p2 = pnand %p631_p1, %p628_p0 }
   0x7   :  { %636 = shalt.err (!%p633_p2)
}
   0x8   :  { %s637_s26 = scalar_lea.vmem %s29_s18, 384  ;;  %p642_p4 = scmp.lt.s32.totalorder %s29_s18, %s29_s18 }
   0x9   :  { %p638_p3 = scmp.ne.s32.totalorder %s29_s18, %s637_s26  ;;  %p643_p5 = scmp.lt.s32.totalorder %s637_s26, %s637_s26 }
   0xb   :  { %p644_p6 = por %p643_p5, %p642_p4 }
   0xd   :  { %p645_p7 = pnand %p644_p6, %p638_p3 }
   0xf   :  { %648 = shalt.err (!%p645_p7)
}
  0x10   :  { %s676_s27 = smov 64   ;;  %s677_s28 = smov 4  }
  0x11   :  { %34 = dma.hbm_to_vmem [thread:$0]  %s862_s2, 384, %s29_s18, [#allocation4], %s676_s27, %s676_s27, %s677_s28  }
  0x12   :  { %s678_s12 = smov [#allocation5]   ;;  %s649_s16 = scalar_lea.hbm %s864_s4, 16 }
  0x13   :  { %s43_s13 = sshll.u32 %s678_s12, 4  ;;  %p650_p8 = scmp.ne.s32.totalorder %s864_s4, %s649_s16  ;;  %s44_s13 = int_to_ptr.vmem [resolvable:$true] %s43_s13 }
  0x14   :  { %p653_p9 = scmp.lt.u32.totalorder %s649_s16, %s864_s4 }
  0x16   :  { %p655_p10 = pnand %p653_p9, %p650_p8 }
  0x18   :  { %658 = shalt.err (!%p655_p10)
}
  0x19   :  { %s659_s22 = scalar_lea.vmem %s44_s13, 16  ;;  %s663_s2 = scalar_lea.vmem %s44_s13, 32 }
  0x1a   :  { %p660_p11 = scmp.ne.s32.totalorder %s44_s13, %s659_s22  ;;  %p664_p12 = scmp.lt.s32.totalorder %s44_s13, %s44_s13 }
  0x1b   :  { %p665_p13 = scmp.lt.s32.totalorder %s663_s2, %s659_s22 }
  0x1d   :  { %p666_p0 = por %p665_p13, %p664_p12 }
  0x1f   :  { %p667_p1 = pnand %p666_p0, %p660_p11 }
  0x21   :  { %670 = shalt.err (!%p667_p1)
}
  0x22   :  { %46 = dma.hbm_to_vmem [thread:$0]  %s864_s4, 16, %s44_s13, [#allocation6]  }
  0x23   :  { %671 = dma.done.wait [#allocation4], 384  }
  0x24   :  { %672 = vsyncadd [#allocation4], 4294966912 }
  0x25   :  { %673 = dma.done.wait [#allocation6], 16  }
  0x26   :  { %674 = vsyncadd [#allocation6], 4294967280  ;;  %v679_v0 = vmov 0.0   ;;  %vm680_vm0 = vmmov 0   ;;  %v610_v1 = vld [vmem:[#allocation3] sm:$0xff]   ;;  %vm81_vm1 = vcmask 1042432   ;;  %v412_v53 = vstv %s870_s10 }
  0x27   :  { %553 = vmatprep.subr.bf16.mxu1 %v679_v0  ;;  %547 = vmatprep.subr.bf16.mxu0 %v679_v0  ;;  %v611_v2 = vld [vmem:[#allocation3 + $0x8] sm:$0xff]   ;;  %v76_v3 = vld [vmem:[%s863_s3] sm:$0x7]  ;;  %vm77_vm2 = vcmask 48128   ;;  %v612_v7 = vld [vmem:[#allocation3 + $0x10] sm:$0xff]   ;;  %vm143_vm3 = vcmask 392192  }
  0x28   :  { %549 = vmatprep.mubr.msk.bf16.mxu0 %vm680_vm0, %v679_v0  ;;  %559 = vmatprep.mubr.msk.bf16.mxu1 %vm680_vm0, %v679_v0  ;;  %v68_v4 = vld [vmem:[%s861_s1] sm:$0xff]  ;;  %v83_v5 = vsel %vm81_vm1, %v76_v3, 0  ;;  %v614_v10 = vld [vmem:[%s865_s5 + $0x8] sm:$0xff]   ;;  %v615_v12 = vld [vmem:[%s865_s5 + $0x10] sm:$0xff]   ;;  %vm252_vm4 = vcmask 785408   ;;  %vm413_vm5 = vcmask 523264  }
  0x29   :  { %554 = vmatpush3.bf16.msra.mxu1 %v610_v1  ;;  %v69_v6 = vpack.c.bf16 %v68_v4, %v68_v4  ;;  %548 = vmatpush3.bf16.msra.mxu0 %v83_v5  ;;  %v613_v8 = vld [vmem:[%s865_s5] sm:$0xff]   ;;  %v616_v13 = vld [vmem:[%s865_s5 + $0x18] sm:$0xff]   ;;  %v618_v15 = vld [vmem:[%s865_s5 + $0x28] sm:$0xff]   ;;  %vm490_vm6 = vcmask 57344  }
  0x2a   :  { %555 = vmatprep.subr.bf16.mxu1 %v679_v0  ;;  %v66_v9 = vld [vmem:[%s860_s0] sm:$0xff]  ;;  %563 = vmatprep.subr.bf16.mxu0 %v679_v0  ;;  %v620_v17 = vld [vmem:[%s867_s7 + $0x8] sm:$0xff]   ;;  %v621_v18 = vld [vmem:[%s867_s7 + $0x10] sm:$0xff]  }
  0x2b   :  { %v67_v11 = vpack.c.bf16 %v66_v9, %v66_v9  ;;  %v617_v14 = vld [vmem:[%s865_s5 + $0x20] sm:$0xff]   ;;  %v622_v19 = vld [vmem:[%s867_s7 + $0x18] sm:$0xff]   ;;  %v624_v21 = vld [vmem:[%s867_s7 + $0x28] sm:$0xff]  }
  0x2c   :  { %550 = vmatmul.mubr.msk.bf16.vlgmr.msra.gmra.mrb[0].mxu0 %vm77_vm2, %v69_v6  ;;  %v619_v16 = vld [vmem:[%s867_s7] sm:$0xff]   ;;  %v503_v27 = vld [vmem:[#allocation5] ss:$0 sm:$0xff]  ;;  %v625_v35 = vld [vmem:[%s867_s7 + $0x30] sm:$0xff]  }
  0x2d   :  { %556 = vmatpush3.bf16.msra.mxu1 %v611_v2  ;;  %564 = vmatpush3.bf16.msra.mxu0 %v613_v8  ;;  %v623_v20 = vld [vmem:[%s867_s7 + $0x20] sm:$0xff]   ;;  %v626_v36 = vld [vmem:[%s867_s7 + $0x38] sm:$0xff]  }
  0x2e   :  { %557 = vmatprep.subr.bf16.mxu1 %v679_v0  ;;  %575 = vmatprep.mubr.msk.bf16.mxu0 %vm680_vm0, %v679_v0  ;;  %v504_v37 = vld [vmem:[%s866_s6] ss:$0 sm:$0xff] }
  0x2f   :  { %565 = vmatprep.subr.bf16.mxu0 %v679_v0  ;;  %v512_v45 = vld [vmem:[%s868_s8] ss:$0 sm:$0xff] }
  0x30   :  { %v410_v52 = vld [vmem:[%s869_s9] sm:$0x1] }
  0x31   :  { %558 = vmatpush3.bf16.msra.mxu1 %v612_v7  ;;  %566 = vmatpush3.bf16.msra.mxu0 %v614_v10 }
  0x32   :  { %579 = vmatprep.subr.bf16.mxu1 %v679_v0  ;;  %567 = vmatprep.subr.bf16.mxu0 %v679_v0 }
  0x34   :  { %560 = vmatmul.mubr.msk.bf16.vlgmr.msra.gmra.mrb[0].mxu1 %vm143_vm3, %v67_v11 }
  0x35   :  { %595 = vmatprep.mubr.msk.bf16.mxu1 %vm680_vm0, %v679_v0  ;;  %568 = vmatpush3.bf16.msra.mxu0 %v615_v12 }
  0x36   :  { %569 = vmatprep.subr.bf16.mxu0 %v679_v0  ;;  %580 = vmatpush3.bf16.msra.mxu1 %v619_v16 }
  0x37   :  { %581 = vmatprep.subr.bf16.mxu1 %v679_v0 }
  0x39   :  { %570 = vmatpush3.bf16.msra.mxu0 %v616_v13 }
  0x3a   :  { %571 = vmatprep.subr.bf16.mxu0 %v679_v0  ;;  %582 = vmatpush3.bf16.msra.mxu1 %v620_v17 }
  0x3b   :  { %583 = vmatprep.subr.bf16.mxu1 %v679_v0 }
  0x3d   :  { %572 = vmatpush3.bf16.msra.mxu0 %v617_v14 }
  0x3e   :  { %573 = vmatprep.subr.bf16.mxu0 %v679_v0  ;;  %584 = vmatpush3.bf16.msra.mxu1 %v621_v18 }
  0x3f   :  { %585 = vmatprep.subr.bf16.mxu1 %v679_v0 }
  0x41   :  { %574 = vmatpush3.bf16.msra.mxu0 %v618_v15 }
  0x42   :  { %599 = vmatprep.subr.mxu0 %v679_v0  ;;  %586 = vmatpush3.bf16.msra.mxu1 %v622_v19 }
  0x43   :  { %587 = vmatprep.subr.bf16.mxu1 %v679_v0 }
  0x46   :  { %588 = vmatpush3.bf16.msra.mxu1 %v623_v20 }
  0x47   :  { %589 = vmatprep.subr.bf16.mxu1 %v679_v0 }
  0x4a   :  { %590 = vmatpush3.bf16.msra.mxu1 %v624_v21 }
  0x4b   :  { %591 = vmatprep.subr.bf16.mxu1 %v679_v0 }
  0x4e   :  { %592 = vmatpush3.bf16.msra.mxu1 %v625_v35 }
  0x4f   :  { %593 = vmatprep.subr.bf16.mxu1 %v679_v0 }
  0x52   :  { %594 = vmatpush3.bf16.msra.mxu1 %v626_v36 }
  0xff   :  { %v119_v22 = vpop.f32.mrb[0].mxu0 }
 0x100   :  { %v551_v23 = vpop.f32.mrb[1].mxu0 }
 0x101   :  { %v122_v24 = vpop.f32.mrb[2].mxu0 }
 0x102   :  { %v552_v25 = vpop.f32.mrb[3].mxu0 }
 0x107   :  { %v181_v26 = vpop.f32.mrb[0].mxu1 }
 0x108   :  { %v182_v28 = vadd.f32 %v181_v26, %v119_v22  ;;  %v561_v29 = vpop.f32.mrb[1].mxu1 }
 0x109   :  { %v184_v30 = vpop.f32.mrb[2].mxu1 }
 0x10a   :  { %v194_v31 = vadd.f32 %v503_v27, %v182_v28  ;;  %v562_v32 = vpop.f32.mrb[3].mxu1 }
 0x10c   :  { %v195_v33 = vmax.f32 %v194_v31, 0.0 }
 0x10e   :  { %v196_v34 = vpack.c.bf16 %v195_v33, %v195_v33 }
 0x110   :  { %576 = vmatmul.mubr.msk.bf16.vlgmr.msra.gmra.mrb[4].mxu0 %vm252_vm4, %v196_v34 }
 0x111   :  { %601 = vmatprep.mubr.msk.f32.mxu0 %vm680_vm0, %v679_v0 }
 0x1e3   :  { %v290_v38 = vpop.f32.mrb[4].mxu0 }
 0x1e4   :  { %v291_v39 = vadd.f32 %v504_v37, %v290_v38  ;;  %v577_v40 = vpop.f32.mrb[5].mxu0 }
 0x1e5   :  { %v293_v41 = vpop.f32.mrb[6].mxu0 }
 0x1e6   :  { %v296_v42 = vmax.f32 %v291_v39, 0.0  ;;  %v578_v43 = vpop.f32.mrb[7].mxu0 }
 0x1e8   :  { %v297_v44 = vpack.c.bf16 %v296_v42, %v296_v42 }
 0x1ea   :  { %596 = vmatmul.mubr.bf16.vlgmr.msra.gmra.mrb[4].mxu1 %v297_v44 }
 0x2bd   :  { %v403_v46 = vpop.f32.mrb[4].mxu1 }
 0x2be   :  { %v404_v47 = vadd.f32 %v512_v45, %v403_v46  ;;  %v597_v48 = vpop.f32.mrb[5].mxu1 }
 0x2bf   :  { %v406_v49 = vpop.f32.mrb[6].mxu1 }
 0x2c0   :  { %v409_v50 = vmax.f32 %v404_v47, 0.0  ;;  %v598_v51 = vpop.f32.mrb[7].mxu1 }
 0x2c2   :  { %600 = vmatpush3.xpose.msk.msra.mxu0 %vm413_vm5, %v409_v50 }
 0x2c5   :  { %602 = vmatmul.mubr.msk.f32.vlgmr.msra.gmra.mrb[8].mxu0 %vm413_vm5, %v410_v52 }
 0x398   :  { %v486_v54 = vpop.f32.mrb[8].mxu0 }
 0x399   :  { %v487_v55 = vadd.f32 %v486_v54, %v412_v53  ;;  %v603_v56 = vpop.f32.mrb[9].mxu0 }
 0x39b   :  { %491 = vst.msk [vmem:[%s871_s11] sm:$0x1] %vm490_vm6, %v487_v55 }
 0x39c   :  { %496 = vsyncpa [#allocation4], 1 }
 0x39d   :  { %497 = vsyncpa [#allocation6], 1 }

</bundles_post_ra>
